<compile_context>
chip_gen: v5e
topology: v5e:2x2
jax: 0.10.0
libtpu: 0.0.40
codegen_flags: <defaults>
</compile_context>

<pallas_src>
import functools

import jax
import jax.numpy as jnp
from jax.experimental import pallas as pl
from jax.experimental.pallas import tpu as pltpu


def _vmem_limit_bytes():
    """Generation-aware scoped-VMEM request (leave ~25% headroom)."""
    cap = 64 * 1024 * 1024          # conservative default (v7x per-core VMEM)
    try:
        cap = int(pltpu.get_tpu_info().vmem_capacity_bytes)
    except Exception:
        pass
    return int(min(96 * 1024 * 1024, (cap * 3) // 4))


def _elementwise_dtype():
    """bf16 part-loop on chips with a bf16 VALU (v6e/v7x); f32 otherwise."""
    try:
        kind = jax.devices()[0].device_kind.lower()
    except Exception:
        kind = ""
    if any(tag in kind for tag in ("v6", "v7", "7x")):
        return jnp.bfloat16
    return jnp.float32


def _choose_tiles(B, C, HW, x_itemsize, comp_itemsize, vmem_limit):
    """Pick (batch_tile, hw_tile) for the (batch, hw) grid."""
    budget = (vmem_limit * 7) // 10
    # Approx. resident bytes per (sample, spatial) element inside the kernel:
    # double-buffered input block (2x) + f32 copy of x + xs (compute dtype)
    # + per-part temp (compute dtype) + slack for logits/probs.
    per_elem = 2 * x_itemsize + 4 + 2 * comp_itemsize + 4

    # 1) HW tile: largest exact divisor of HW whose single-sample working set
    #    fits the budget (divisors only -> no spatial padding garbage in GAP).
    hw_tile = HW
    if C * HW * per_elem > budget:
        hw_tile = 1
        for t in range(HW, 0, -1):
            if HW % t == 0 and C * t * per_elem <= budget:
                hw_tile = t
                break

    # 2) Batch tile: target ~6 MiB of input DMA per grid step, clamped by the
    #    working-set budget.
    per_sample_x = C * hw_tile * x_itemsize
    per_sample_ws = C * hw_tile * per_elem
    bt = max(1, min((6 * 1024 * 1024) // max(per_sample_x, 1),
                    budget // max(per_sample_ws, 1)))
    bt = min(bt, B)

    # Prefer >= 4 pipelined steps over a single maximal tile when the batch
    # axis is the only pipelining axis (hides N-1 of N input DMAs).
    if HW // hw_tile <= 1 and B > 1:
        min_steps = min(4, B)
        bt = min(bt, max(1, pl.cdiv(B, min_steps)))
    # Prefer an even batch-step count (balances the two v7x TensorCores).
    while bt > 1 and (pl.cdiv(B, bt) % 2) == 1:
        bt -= 1
    return int(bt), int(hw_tile)


def _rpp_kernel(x_ref, wconv_ref, bn_ref, out_ref, *, num_parts, compute_dtype):
    # x_ref:     (Bt, C, HWt)  input tile (native dtype)
    # wconv_ref: (P, C)        1x1 conv weight (squeezed), f32
    # bn_ref:    (C, 2)        col 0 = gamma*inv_std/HW, col 1 = (beta-mu*gamma*inv_std)/HW
    # out_ref:   (Bt, C, P)    f32, accumulated across the HW grid axis
    @pl.when(pl.program_id(1) == 0)
    def _init():
        out_ref[...] = jnp.zeros_like(out_ref)

    x = x_ref[...].astype(jnp.float32)                       # (Bt, C, HWt)
    wc = wconv_ref[...]                                      # (P, C)
    bn = bn_ref[...]                                         # (C, 2)
    scale_c = bn[:, 0:1]                                     # (C, 1)
    shift_c = bn[:, 1:2]                                     # (C, 1)

    # 1x1 conv over channels == one batched MXU contraction; the weight stays
    # resident in VMEM across the whole grid.
    logits = jnp.einsum('pc,bcs->bps', wc, x,
                        preferred_element_type=jnp.float32)  # (Bt, P, HWt)

    # Softmax over the part axis; approximate reciprocal uses the EUP slot.
    m = jnp.max(logits, axis=1, keepdims=True)
    e = jnp.exp(logits - m)
    probs = e * pl.reciprocal(jnp.sum(e, axis=1, keepdims=True), approx=True)
    probs = probs.astype(compute_dtype)

    # Folded BN (+ folded 1/HW):  GAP(ReLU(BN(x*p))) = sum_s ReLU(x*scale'*p + shift')
    # Channel-scale multiply hoisted out of the part loop; the shift is a
    # (1, C, 1) in-vreg broadcast (no materialized slab).
    xs = (x * scale_c[None]).astype(compute_dtype)           # (Bt, C, HWt)
    shift_b = shift_c[None].astype(compute_dtype)            # (1, C, 1)

    cols = []
    for i in range(num_parts):                               # small static loop (P=6)
        p_i = probs[:, i:i + 1, :]                           # (Bt, 1, HWt)
        y = jnp.maximum(xs * p_i + shift_b, 0)               # bf16/f32 elementwise
        cols.append(jnp.sum(y, axis=-1, keepdims=True,
                            dtype=jnp.float32))              # f32 GAP partial sum
    out_ref[...] += jnp.concatenate(cols, axis=-1)           # (Bt, C, P)


def rpp_forward(x, conv_w, gamma, beta, running_mean, running_var, eps=1e-5,
                batch_tile=None, hw_tile=None, compute_dtype=None):
    """x: (B, C, H, W) NCHW (any float dtype); conv_w: (P, C, 1, 1). Returns (B, C, P) f32."""
    B, C, H, W = x.shape
    P = conv_w.shape[0]
    HW = H * W

    # Keep the caller's dtype for the dominant input stream (pass bf16 to
    # halve HBM->VMEM traffic); upcast happens inside the kernel.
    x2 = x.reshape(B, C, HW)
    wc = conv_w.reshape(P, C).astype(jnp.float32)

    g = gamma.astype(jnp.float32)
    inv_std = 1.0 / jnp.sqrt(running_var.astype(jnp.float32) + eps)
    # Fold the GAP 1/HW into the affine BN constants (relu(z)/HW == relu(z/HW)).
    scale = g * inv_std / HW
    shift = (beta.astype(jnp.float32)
             - running_mean.astype(jnp.float32) * g * inv_std) / HW
    bn = jnp.stack([scale, shift], axis=-1)                  # (C, 2)

    if compute_dtype is None:
        compute_dtype = _elementwise_dtype()

    vmem_limit = _vmem_limit_bytes()
    bt_auto, hwt_auto = _choose_tiles(
        B, C, HW, jnp.dtype(x2.dtype).itemsize,
        jnp.dtype(compute_dtype).itemsize, vmem_limit)
    bt = int(batch_tile) if batch_tile is not None else bt_auto
    hwt = int(hw_tile) if hw_tile is not None else hwt_auto

    kernel = functools.partial(_rpp_kernel, num_parts=P,
                               compute_dtype=compute_dtype)

    out = pl.pallas_call(
        kernel,
        out_shape=jax.ShapeDtypeStruct((B, C, P), jnp.float32),
        grid_spec=pltpu.PrefetchScalarGridSpec(
            num_scalar_prefetch=0,
            grid=(pl.cdiv(B, bt), pl.cdiv(HW, hwt)),
            in_specs=[
                pl.BlockSpec((bt, C, hwt), lambda b, h: (b, 0, h)),  # x tile
                pl.BlockSpec((P, C), lambda b, h: (0, 0)),           # conv weight
                pl.BlockSpec((C, 2), lambda b, h: (0, 0)),           # BN scale/shift
            ],
            out_specs=pl.BlockSpec((bt, C, P), lambda b, h: (b, 0, 0)),
        ),
        compiler_params=pltpu.CompilerParams(
            dimension_semantics=("parallel", "arbitrary"),
            vmem_limit_bytes=vmem_limit,
        ),
    )(x2, wc, bn)
    return out


def rpp_reference(x, conv_w, gamma, beta, running_mean, running_var, eps=1e-5):
    """Pure-JAX reference mirroring the PyTorch forward (eval-mode BN)."""
    B, C, H, W = x.shape
    P = conv_w.shape[0]
    w = jnp.einsum('pc,bchw->bphw', conv_w.reshape(P, C), x)
    p = jax.nn.softmax(w, axis=1)
    g = gamma[None, :, None, None]
    b_ = beta[None, :, None, None]
    mu = running_mean[None, :, None, None]
    inv_std = 1.0 / jnp.sqrt(running_var + eps)[None, :, None, None]
    outs = []
    for i in range(P):
        y = x * p[:, i:i + 1, :, :]
        y = (y - mu) * inv_std * g + b_
        y = jnp.maximum(y, 0.0)
        y = jnp.mean(y, axis=(2, 3), keepdims=True)          # (B, C, 1, 1)
        outs.append(y)
    f = jnp.concatenate(outs, axis=2)                        # (B, C, P, 1)
    return f.reshape(B, C, -1)                               # (B, C, P)


if __name__ == "__main__":
    key = jax.random.PRNGKey(0)
    B, C, H, W = 2, 4, 16, 16
    num_parts = 6

    kx, kw = jax.random.split(key)
    x = jax.random.normal(kx, (B, C, H, W), dtype=jnp.float32)

    # Conv2d(C, num_parts, 1x1, bias=False): weight (P, C, 1, 1),
    # kaiming_normal_ with mode='fan_out' -> std = sqrt(2 / (P * 1 * 1))
    fan_out = num_parts * 1 * 1
    conv_w = ((2.0 / fan_out) ** 0.5) * jax.random.normal(
        kw, (num_parts, C, 1, 1), dtype=jnp.float32)

    # BatchNorm2d(C) after init_weights(): weight=1, bias=0; default running stats.
    gamma = jnp.ones((C,), jnp.float32)
    beta = jnp.zeros((C,), jnp.float32)
    running_mean = jnp.zeros((C,), jnp.float32)
    running_var = jnp.ones((C,), jnp.float32)

    out = rpp_forward(x, conv_w, gamma, beta, running_mean, running_var)
    out = jax.block_until_ready(out)

    ref = rpp_reference(x, conv_w, gamma, beta, running_mean, running_var)
    assert out.shape == (B, C, num_parts), out.shape
    # Tolerance accounts for the EUP approximate reciprocal in the softmax and
    # the bf16 part-loop on v6e/v7x (GAP still accumulates in f32).
    assert jnp.allclose(out, ref, atol=5e-3, rtol=5e-3), (
        f"max abs err {jnp.max(jnp.abs(out - ref))}")
    print("KERNEL_OK")
</pallas_src>

<mosaic_0001>
module attributes {stable_mosaic.version = 11 : i64} {
  func.func @_rpp_kernel(%arg0: i32, %arg1: i32, %arg2: memref<1x4x256xf32, #tpu.memory_space<vmem>>, %arg3: memref<6x4xf32, #tpu.memory_space<vmem>>, %arg4: memref<4x2xf32, #tpu.memory_space<vmem>>, %arg5: memref<1x4x6xf32, #tpu.memory_space<vmem>>) attributes {dimension_semantics = [#tpu.dimension_semantics<parallel>, #tpu.dimension_semantics<arbitrary>], iteration_bounds = array<i64: 2, 1>, scalar_prefetch = 0 : i64, scratch_operands = 0 : i64, tpu.core_type = #tpu.core_type<tc>, window_params = [{transform_indices = @transform_0, window_bounds = array<i64: 1, 4, 256>}, {pipeline_mode = #tpu.pipeline_mode<synchronous>, transform_indices = @transform_1, window_bounds = array<i64: 6, 4>}, {pipeline_mode = #tpu.pipeline_mode<synchronous>, transform_indices = @transform_2, window_bounds = array<i64: 4, 2>}, {transform_indices = @transform_3, window_bounds = array<i64: 1, 4, 6>}]} {
    %c0_i32 = arith.constant 0 : i32
    %0 = arith.cmpi eq, %arg1, %c0_i32 : i32
    %1 = arith.extui %0 : i1 to i32
    %c0_i32_0 = arith.constant 0 : i32
    %2 = arith.cmpi ne, %1, %c0_i32_0 : i32
    scf.if %2 {
      %cst_27 = arith.constant 0.000000e+00 : f32
      %82 = vector.broadcast %cst_27 : f32 to vector<1x4x6xf32>
      %c0_28 = arith.constant 0 : index
      %c0_29 = arith.constant 0 : index
      %c0_30 = arith.constant 0 : index
      %83 = vector.load %arg5[%c0_28, %c0_29, %c0_30] : memref<1x4x6xf32, #tpu.memory_space<vmem>>, vector<1x4x6xf32>
      tpu.vector_store %arg5[%c0_28, %c0_29, %c0_30], %82 {strides = array<i32>} : memref<1x4x6xf32, #tpu.memory_space<vmem>>, vector<1x4x6xf32>,
    } else {
    }
    %c0 = arith.constant 0 : index
    %c0_1 = arith.constant 0 : index
    %c0_2 = arith.constant 0 : index
    %3 = vector.load %arg2[%c0, %c0_1, %c0_2] : memref<1x4x256xf32, #tpu.memory_space<vmem>>, vector<1x4x256xf32>
    %c0_3 = arith.constant 0 : index
    %c0_4 = arith.constant 0 : index
    %4 = vector.load %arg3[%c0_3, %c0_4] : memref<6x4xf32, #tpu.memory_space<vmem>>, vector<6x4xf32>
    %c0_5 = arith.constant 0 : index
    %c0_6 = arith.constant 0 : index
    %5 = vector.load %arg4[%c0_5, %c0_6] : memref<4x2xf32, #tpu.memory_space<vmem>>, vector<4x2xf32>
    %6 = vector.extract_strided_slice %5 {offsets = [0, 0], sizes = [4, 1], strides = [1, 1]} : vector<4x2xf32> to vector<4x1xf32>
    %7 = vector.extract_strided_slice %5 {offsets = [0, 1], sizes = [4, 1], strides = [1, 1]} : vector<4x2xf32> to vector<4x1xf32>
    "tpu.trace_start"() <{level = 10 : i32, message = "pc,bcs->bps"}> : () -> ()
    %cst = arith.constant dense<0.000000e+00> : vector<1x256x6xf32>
    %8 = tpu.matmul %3, %4, %cst {dimension_numbers = #tpu.dot_dimension_numbers<[1], [1], [0, 2], [0], [0, 0, 0, 2, 1, 0], [], []>} : vector<1x4x256xf32>, vector<6x4xf32>, vector<1x256x6xf32> -> vector<1x256x6xf32>
    %9 = tpu.transpose %8, [0, 2, 1] : vector<1x256x6xf32> -> vector<1x6x256xf32>
    "tpu.trace_stop"() : () -> ()
    %cst_7 = arith.constant dense<0xFF800000> : vector<1x256xf32>
    %10 = vector.multi_reduction <maximumf>, %9, %cst_7 [1] : vector<1x6x256xf32> to vector<1x256xf32>
    %11 = vector.shape_cast %10 : vector<1x256xf32> to vector<1x1x256xf32>
    %12 = vector.broadcast %11 : vector<1x1x256xf32> to vector<1x6x256xf32>
    %13 = arith.subf %9, %12 : vector<1x6x256xf32>
    %14 = math.exp %13 : vector<1x6x256xf32>
    %cst_8 = arith.constant dense<0.000000e+00> : vector<1x256xf32>
    %15 = vector.multi_reduction <add>, %14, %cst_8 [1] : vector<1x6x256xf32> to vector<1x256xf32>
    %16 = vector.shape_cast %15 : vector<1x256xf32> to vector<1x1x256xf32>
    %17 = tpu.reciprocal %16 {approx = true} : vector<1x1x256xf32> -> vector<1x1x256xf32>
    %18 = vector.broadcast %17 : vector<1x1x256xf32> to vector<1x6x256xf32>
    %19 = arith.mulf %14, %18 : vector<1x6x256xf32>
    %20 = vector.shape_cast %6 : vector<4x1xf32> to vector<1x4x1xf32>
    %21 = vector.broadcast %20 : vector<1x4x1xf32> to vector<1x4x256xf32>
    %22 = arith.mulf %3, %21 : vector<1x4x256xf32>
    %23 = vector.shape_cast %7 : vector<4x1xf32> to vector<1x4x1xf32>
    %24 = vector.extract_strided_slice %19 {offsets = [0, 0, 0], sizes = [1, 1, 256], strides = [1, 1, 1]} : vector<1x6x256xf32> to vector<1x1x256xf32>
    %25 = vector.broadcast %24 : vector<1x1x256xf32> to vector<1x4x256xf32>
    %26 = arith.mulf %22, %25 : vector<1x4x256xf32>
    %27 = vector.broadcast %23 : vector<1x4x1xf32> to vector<1x4x256xf32>
    %28 = arith.addf %26, %27 : vector<1x4x256xf32>
    %cst_9 = arith.constant 0.000000e+00 : f32
    %29 = vector.broadcast %cst_9 : f32 to vector<1x4x256xf32>
    %30 = arith.maximumf %28, %29 : vector<1x4x256xf32>
    %cst_10 = arith.constant dense<0.000000e+00> : vector<1x4xf32>
    %31 = vector.multi_reduction <add>, %30, %cst_10 [2] : vector<1x4x256xf32> to vector<1x4xf32>
    %32 = vector.shape_cast %31 : vector<1x4xf32> to vector<1x4x1xf32>
    %33 = vector.extract_strided_slice %19 {offsets = [0, 1, 0], sizes = [1, 1, 256], strides = [1, 1, 1]} : vector<1x6x256xf32> to vector<1x1x256xf32>
    %34 = vector.broadcast %33 : vector<1x1x256xf32> to vector<1x4x256xf32>
    %35 = arith.mulf %22, %34 : vector<1x4x256xf32>
    %36 = vector.broadcast %23 : vector<1x4x1xf32> to vector<1x4x256xf32>
    %37 = arith.addf %35, %36 : vector<1x4x256xf32>
    %cst_11 = arith.constant 0.000000e+00 : f32
    %38 = vector.broadcast %cst_11 : f32 to vector<1x4x256xf32>
    %39 = arith.maximumf %37, %38 : vector<1x4x256xf32>
    %cst_12 = arith.constant dense<0.000000e+00> : vector<1x4xf32>
    %40 = vector.multi_reduction <add>, %39, %cst_12 [2] : vector<1x4x256xf32> to vector<1x4xf32>
    %41 = vector.shape_cast %40 : vector<1x4xf32> to vector<1x4x1xf32>
    %42 = vector.extract_strided_slice %19 {offsets = [0, 2, 0], sizes = [1, 1, 256], strides = [1, 1, 1]} : vector<1x6x256xf32> to vector<1x1x256xf32>
    %43 = vector.broadcast %42 : vector<1x1x256xf32> to vector<1x4x256xf32>
    %44 = arith.mulf %22, %43 : vector<1x4x256xf32>
    %45 = vector.broadcast %23 : vector<1x4x1xf32> to vector<1x4x256xf32>
    %46 = arith.addf %44, %45 : vector<1x4x256xf32>
    %cst_13 = arith.constant 0.000000e+00 : f32
    %47 = vector.broadcast %cst_13 : f32 to vector<1x4x256xf32>
    %48 = arith.maximumf %46, %47 : vector<1x4x256xf32>
    %cst_14 = arith.constant dense<0.000000e+00> : vector<1x4xf32>
    %49 = vector.multi_reduction <add>, %48, %cst_14 [2] : vector<1x4x256xf32> to vector<1x4xf32>
    %50 = vector.shape_cast %49 : vector<1x4xf32> to vector<1x4x1xf32>
    %51 = vector.extract_strided_slice %19 {offsets = [0, 3, 0], sizes = [1, 1, 256], strides = [1, 1, 1]} : vector<1x6x256xf32> to vector<1x1x256xf32>
    %52 = vector.broadcast %51 : vector<1x1x256xf32> to vector<1x4x256xf32>
    %53 = arith.mulf %22, %52 : vector<1x4x256xf32>
    %54 = vector.broadcast %23 : vector<1x4x1xf32> to vector<1x4x256xf32>
    %55 = arith.addf %53, %54 : vector<1x4x256xf32>
    %cst_15 = arith.constant 0.000000e+00 : f32
    %56 = vector.broadcast %cst_15 : f32 to vector<1x4x256xf32>
    %57 = arith.maximumf %55, %56 : vector<1x4x256xf32>
    %cst_16 = arith.constant dense<0.000000e+00> : vector<1x4xf32>
    %58 = vector.multi_reduction <add>, %57, %cst_16 [2] : vector<1x4x256xf32> to vector<1x4xf32>
    %59 = vector.shape_cast %58 : vector<1x4xf32> to vector<1x4x1xf32>
    %60 = vector.extract_strided_slice %19 {offsets = [0, 4, 0], sizes = [1, 1, 256], strides = [1, 1, 1]} : vector<1x6x256xf32> to vector<1x1x256xf32>
    %61 = vector.broadcast %60 : vector<1x1x256xf32> to vector<1x4x256xf32>
    %62 = arith.mulf %22, %61 : vector<1x4x256xf32>
    %63 = vector.broadcast %23 : vector<1x4x1xf32> to vector<1x4x256xf32>
    %64 = arith.addf %62, %63 : vector<1x4x256xf32>
    %cst_17 = arith.constant 0.000000e+00 : f32
    %65 = vector.broadcast %cst_17 : f32 to vector<1x4x256xf32>
    %66 = arith.maximumf %64, %65 : vector<1x4x256xf32>
    %cst_18 = arith.constant dense<0.000000e+00> : vector<1x4xf32>
    %67 = vector.multi_reduction <add>, %66, %cst_18 [2] : vector<1x4x256xf32> to vector<1x4xf32>
    %68 = vector.shape_cast %67 : vector<1x4xf32> to vector<1x4x1xf32>
    %69 = vector.extract_strided_slice %19 {offsets = [0, 5, 0], sizes = [1, 1, 256], strides = [1, 1, 1]} : vector<1x6x256xf32> to vector<1x1x256xf32>
    %70 = vector.broadcast %69 : vector<1x1x256xf32> to vector<1x4x256xf32>
    %71 = arith.mulf %22, %70 : vector<1x4x256xf32>
    %72 = vector.broadcast %23 : vector<1x4x1xf32> to vector<1x4x256xf32>
    %73 = arith.addf %71, %72 : vector<1x4x256xf32>
    %cst_19 = arith.constant 0.000000e+00 : f32
    %74 = vector.broadcast %cst_19 : f32 to vector<1x4x256xf32>
    %75 = arith.maximumf %73, %74 : vector<1x4x256xf32>
    %cst_20 = arith.constant dense<0.000000e+00> : vector<1x4xf32>
    %76 = vector.multi_reduction <add>, %75, %cst_20 [2] : vector<1x4x256xf32> to vector<1x4xf32>
    %77 = vector.shape_cast %76 : vector<1x4xf32> to vector<1x4x1xf32>
    %c0_21 = arith.constant 0 : index
    %c0_22 = arith.constant 0 : index
    %c0_23 = arith.constant 0 : index
    %78 = vector.load %arg5[%c0_21, %c0_22, %c0_23] : memref<1x4x6xf32, #tpu.memory_space<vmem>>, vector<1x4x6xf32>
    %79 = tpu.concatenate %32, %41, %50, %59, %68, %77 in 2 : vector<1x4x1xf32>, vector<1x4x1xf32>, vector<1x4x1xf32>, vector<1x4x1xf32>, vector<1x4x1xf32>, vector<1x4x1xf32> -> vector<1x4x6xf32>
    %80 = arith.addf %78, %79 : vector<1x4x6xf32>
    %c0_24 = arith.constant 0 : index
    %c0_25 = arith.constant 0 : index
    %c0_26 = arith.constant 0 : index
    %81 = vector.load %arg5[%c0_24, %c0_25, %c0_26] : memref<1x4x6xf32, #tpu.memory_space<vmem>>, vector<1x4x6xf32>
    tpu.vector_store %arg5[%c0_24, %c0_25, %c0_26], %80 {strides = array<i32>} : memref<1x4x6xf32, #tpu.memory_space<vmem>>, vector<1x4x6xf32>,
    return
  }
  func.func @transform_0(%arg0: i32, %arg1: i32) -> (i32, i32, i32) {
    %c0_i32 = arith.constant 0 : i32
    %c0_i32_0 = arith.constant 0 : i32
    return %arg0, %c0_i32, %arg1 : i32, i32, i32
  }
  func.func @transform_1(%arg0: i32, %arg1: i32) -> (i32, i32) {
    %c0_i32 = arith.constant 0 : i32
    %c0_i32_0 = arith.constant 0 : i32
    %c0_i32_1 = arith.constant 0 : i32
    return %c0_i32, %c0_i32_0 : i32, i32
  }
  func.func @transform_2(%arg0: i32, %arg1: i32) -> (i32, i32) {
    %c0_i32 = arith.constant 0 : i32
    %c0_i32_0 = arith.constant 0 : i32
    %c0_i32_1 = arith.constant 0 : i32
    return %c0_i32, %c0_i32_0 : i32, i32
  }
  func.func @transform_3(%arg0: i32, %arg1: i32) -> (i32, i32, i32) {
    %c0_i32 = arith.constant 0 : i32
    %c0_i32_0 = arith.constant 0 : i32
    %c0_i32_1 = arith.constant 0 : i32
    return %arg0, %c0_i32, %c0_i32_0 : i32, i32, i32
  }
}

</mosaic_0001>

<bundles_post_ra>
// kernel: tpu_custom_call.1
= control target key start
LH: loop header
LB: loop body
LE: loop exit
PB: predicated region body
PF: predicated region fallthrough
CT: control target
= control target key end

     0   :  { %8 = vsyncpa [#allocation3], 0  ;;  %s1338_s0 = inlined_call_operand.hbm [shape: f32[2,4,256], index: 0, kind: input, shape index: {}]   ;;  %s1339_s1 = inlined_call_operand.vmem [shape: f32[6,4], index: 1, kind: input, shape index: {}]   ;;  %s1340_s2 = inlined_call_operand.vmem [shape: f32[4,2], index: 2, kind: input, shape index: {}]   ;;  %s1341_s3 = inlined_call_operand.hbm [shape: f32[2,4,6], index: 3, kind: output, shape index: {}]  }
   0x1   :  { %10 = vsyncpa [#allocation3 + $0x1], 0 }
   0x2   :  { %11 = vsyncpa [#allocation4], 0 }
   0x3   :  { %13 = vsyncpa [#allocation4 + $0x1], 0  ;;  %s1122_s12 = smov 0   ;;  %s1124_s13 = smov 0  }
   0x4   :  { %s1126_s14 = smov 0   ;;  %s1128_s15 = smov 0  }
   0x5   :  { %s1130_s16 = smov 0   ;;  %s1132_s17 = smov 0  }
   0x6 LB: > { %s856_s18 = sadd.s32 4294967295, %s1096_s17   ;;  %s857_s19 = sadd.s32 4294967294, %s1096_s17   ;;  %s1096_s17 = sphi %s1132_s17, %s19_s17   ;;  %s1092_s16 = sphi %s1130_s16, %s1350_s16   ;;  %s1088_s15 = sphi %s1128_s15, %s1349_s15   ;;  %s1084_s14 = sphi %s1126_s14, %s1348_s14   ;;  %s1080_s13 = sphi %s1124_s13, %s1347_s13   ;;  %s1076_s12 = sphi %s1122_s12, %s1346_s12  }
   0x7   : > { %s31_s20 = sadd.s32 1, %s1092_s16  ;;  %s40_s21 = sadd.s32 1, %s1084_s14 }
   0x8   : > { %p33_p0 = scmp.ge.s32.totalorder %s31_s20, 2  ;;  %p47_p1 = scmp.ne.s32.totalorder %s1084_s14, %s1080_s13 }
   0x9   : > { %p48_p2 = scmp.eq.s32.totalorder %s1096_s17, 0  ;;  %p53_p3 = scmp.ne.s32.totalorder %s1080_s13, %s1076_s12 }
   0xa   : > { %s1352_s20 = smov (%p33_p0, %s31_s20), 0  ;;  %p54_p5 = scmp.eq.s32.totalorder %s856_s18, 0 }
   0xb   : > { %p1163_p4 = por %p48_p2, %p47_p1  ;;  %s35_s23 = ssub.s32 %s1092_s16, %s1352_s20 }
   0xc   : > { %p119_p6 = scmp.eq.s32.totalorder %s856_s18, 1  ;;  %p38_p7 = scmp.eq.s32.totalorder %s35_s23, 0 }
   0xd   : > { %p1169_p8 = por %p54_p5, %p53_p3  ;;  %p125_p10 = scmp.eq.s32.totalorder %s857_s19, 1 }
   0xe   : > { %p1173_p9 = por %p119_p6, %p47_p1  ;;  %p859_p12 = scmp.ge.s32.totalorder %s1096_s17, 2 }
   0xf   : > { %s1178_s26 = scalar_select %p38_p7, %s1084_s14, %s40_s21  }
  0x10   : > { %p1180_p11 = por %p125_p10, %p53_p3  ;;  %p919_p13 = scmp.lt.s32.totalorder %s1096_s17, 2 }
  0x11   : > { %s151_s28 = sand.u32 1, %s1084_s14   ;;  %s903_s30 = sshll.u32 %s1092_s16, 3 }
  0x12   : > { %s860_s29 = sshll.u32 %s151_s28, 3  ;;  %s162_s6 = scalar_lea.hbm %s1338_s0, %s903_s30 }
  0x13   : > { %s155_s7 = scalar_lea.vmem [#allocation2], %s860_s29  ;;  %s164_s9 = sshll.u32 %s162_s6, 4  ;;  %s165_s9 = int_to_ptr.hbm [resolvable:$true] %s164_s9 }
  0x14   : > { %s166_s8 = sshll.u32 %s155_s7, 4  ;;  %p912_p0 = pnand %p919_p13, %p1163_p4  ;;  %s167_s8 = int_to_ptr.vmem [resolvable:$true] %s166_s8 }
  0x15   : > { %p863_p1 = scmp.ge.s32.totalorder %s1096_s17, 1  ;;  %p171_p2 = scmp.lt.s32.totalorder %s1096_s17, 3 }
  0x16   : > { %s152_s10 = scalar_lea.sflag [#allocation3], %s151_s28 }
  0x17   : > { %914 = dma.hbm_to_vmem [thread:$0]  (!%p912_p0), %s165_s9, 128, %s167_s8, %s152_s10  }
  0x18   : > { %p172_p3 = pnand %p863_p1, %p171_p2 }
  0x19   : > { %s1196_s11 = sand.u32 (!%p172_p3), 1, %s1080_s13  }
  0x1a   : > { %175 = sbr.rel (%p172_p3) target bundleno = 968 (0x3c8), region = 32  ;;  %s864_s18 = sshll.u32 (!%p172_p3), %s1196_s11, 3 }
  0x1b   : > { %s178_s19 = scalar_lea.sflag (!%p172_p3), [#allocation3], %s1196_s11  ;;  %s181_s21 = scalar_lea.vmem (!%p172_p3), [#allocation2], %s864_s18 }
  0x1f   : > { %1067 = dma.done.wait (%p1169_p8), %s178_s19, 128  }
  0x20   : > { %1069 = vsyncadd (%p1169_p8), %s178_s19, 4294967168  ;;  %v1204_v0 = vld [vmem:[%s181_s21] sm:$0xff]  ;;  %v213_v2 = vld [vmem:[%s1339_s1] sm:$0x3f]  ;;  %vm285_vm0 = vcmask 31744   ;;  %vm562_vm1 = vcmask 1045504  }
  0x21   : > { %216 = vst [vmem:[#allocation1] ss:$2 sm:$0xff] %v1204_v0  ;;  %905 = vmatpush.xpose.msk.msra.mxu2 %vm285_vm0, %v213_v2  ;;  %906 = vmatpush.xpose.msk.msra.mxu3 %vm285_vm0, %v213_v2  ;;  %vm616_vm2 = vcmask 1043456   ;;  %s865_s29 = sshll.u32 %s1196_s11, 2  ;;  %vm210_vm3 = vcmask 44032   ;;  %s900_s4 = sshll.u32 %s1088_s15, 2 }
  0x22   : > { %866 = vmatpush.xpose.msk.msra.mxu0 %vm285_vm0, %v213_v2  ;;  %904 = vmatpush.xpose.msk.msra.mxu1 %vm285_vm0, %v213_v2  ;;  %s204_s30 = scalar_lea.vmem [#allocation5], %s865_s29  ;;  %vm747_vm4 = vcmask 7168   ;;  %vm749_vm5 = vcmask 15360   ;;  %vm751_vm6 = vcmask 23552   ;;  %s770_s7 = scalar_lea.hbm %s1341_s3, %s900_s4  ;;  %vm754_vm7 = vcmask 39936  }
  0x23   : > { %s772_s8 = sshll.u32 %s204_s30, 4  ;;  %s774_s9 = sshll.u32 %s770_s7, 4  ;;  %s773_s8 = int_to_ptr.vmem [resolvable:$true] %s772_s8  ;;  %s775_s9 = int_to_ptr.hbm [resolvable:$true] %s774_s9 }
  0x24   : > { %s760_s15 = scalar_lea.sflag [#allocation4], %s1196_s11  ;;  %s1028_s10 = sshra.s32 %s775_s9, 4  ;;  %s1029_s10 = int_to_ptr.hbm [resolvable:$true] %s1028_s10 }
  0x25   : > { %s1030_s18 = scalar_lea.hbm %s1029_s10, 4  ;;  %s1034_s22 = scalar_lea.hbm %s1341_s3, 8 }
  0x26   : > { %p1031_p4 = scmp.ne.s32.totalorder %s1029_s10, %s1030_s18  ;;  %p1035_p7 = scmp.lt.s32.totalorder %s1029_s10, %s1341_s3 }
  0x27   : > { %p1036_p8 = scmp.lt.s32.totalorder %s1034_s22, %s1030_s18 }
  0x28   : > { %v218_v1 = vld.sshfl [vmem:[#allocation1 + $0x8] sm:$0xff pattern:$0x75316420]  ;;  %v217_v3 = vld.sshfl [vmem:[#allocation1] sm:$0xff pattern:$0x75316420]  ;;  %p1032_p5 = pnand %p1031_p4, %p1173_p9 }
  0x29   : > { %253 = vxpose.xlu0.b32.start.end [1/1] (short) %v218_v1, 128  ;;  %p1037_p10 = por %p1036_p8, %p1035_p7 }
  0x2a   : > { %p1033_p6 = pneg %p1032_p5 }
  0x2c   : > { %p1038_p13 = pnand %p1037_p10, %p1033_p6 }
  0xa9   : > { %221 = vxpose.xlu0.b32.start.end [1/1] (short) %v217_v3, 128 }
  0xcd   : > { %v269_v4 = vpop.trf.xlu0 }
  0xce   : > { %883 = vmatmul.msk.f32.vlgmr.msra.gmra.mxu2 %vm285_vm0, %v269_v4 }
  0xd5   : > { %v270_v5 = vpop.trf.xlu0 }
  0xd6   : > { %884 = vmatmul.msk.f32.gmra.mxu2 %vm285_vm0, %v270_v5  ;;  %v214_v5 = vld [vmem:[%s1340_s2] sm:$0xf] }
  0xdd   : > { %v271_v6 = vpop.trf.xlu0 }
  0xde   : > { %885 = vmatmul.msk.f32.gmra.mxu2 %vm285_vm0, %v271_v6  ;;  %v1098_v6 = vmov 1  }
  0xe5   : > { %v272_v7 = vpop.trf.xlu0 }
  0xe6   : > { %886 = vmatmul.msk.f32.gmra.mxu2 %vm285_vm0, %v272_v7  ;;  %v1099_v7 = vmov 0  }
  0xed   : > { %v273_v8 = vpop.trf.xlu0 }
  0xee   : > { %887 = vmatmul.msk.f32.gmra.mxu2 %vm285_vm0, %v273_v8 }
  0xf5   : > { %v274_v9 = vpop.trf.xlu0 }
  0xf6   : > { %888 = vmatmul.msk.f32.gmra.mxu2 %vm285_vm0, %v274_v9 }
  0xfd   : > { %v275_v10 = vpop.trf.xlu0 }
  0xfe   : > { %889 = vmatmul.msk.f32.gmra.mxu2 %vm285_vm0, %v275_v10 }
 0x105   : > { %v276_v11 = vpop.trf.xlu0 }
 0x106   : > { %890 = vmatmul.msk.f32.gmra.mxu2 %vm285_vm0, %v276_v11 }
 0x10d   : > { %v277_v12 = vpop.trf.xlu0 }
 0x10e   : > { %891 = vmatmul.msk.f32.vlgmr.msra.gmra.mxu3 %vm285_vm0, %v277_v12 }
 0x110   : > { %975 = vset.pattern.permute.xlu0 %v1098_v6 }
 0x115   : > { %v278_v13 = vpop.trf.xlu0 }
 0x116   : > { %892 = vmatmul.msk.f32.gmra.mxu3 %vm285_vm0, %v278_v13 }
 0x11d   : > { %v279_v14 = vpop.trf.xlu0 }
 0x11e   : > { %893 = vmatmul.msk.f32.gmra.mxu3 %vm285_vm0, %v279_v14 }
 0x125   : > { %v280_v15 = vpop.trf.xlu0 }
 0x126   : > { %894 = vmatmul.msk.f32.gmra.mxu3 %vm285_vm0, %v280_v15 }
 0x12d   : > { %v281_v16 = vpop.trf.xlu0 }
 0x12e   : > { %895 = vmatmul.msk.f32.gmra.mxu3 %vm285_vm0, %v281_v16 }
 0x135   : > { %v282_v17 = vpop.trf.xlu0 }
 0x136   : > { %896 = vmatmul.msk.f32.gmra.mxu3 %vm285_vm0, %v282_v17 }
 0x13d   : > { %v283_v18 = vpop.trf.xlu0 }
 0x13e   : > { %897 = vmatmul.msk.f32.gmra.mxu3 %vm285_vm0, %v283_v18 }
 0x145   : > { %v284_v19 = vpop.trf.xlu0 }
 0x146   : > { %898 = vmatmul.msk.f32.gmra.mxu3 %vm285_vm0, %v284_v19 }
 0x14d   : > { %v237_v20 = vpop.trf.xlu0 }
 0x14e   : > { %867 = vmatmul.msk.f32.vlgmr.msra.gmra.mxu0 %vm285_vm0, %v237_v20 }
 0x151   : > { %v450_v21 = vpop.f32.mrf.mxu2 }
 0x152   : > { %530 = vxpose.xlu2.b32.start [1/16] (narrow) %v450_v21, 8 }
 0x155   : > { %v238_v22 = vpop.trf.xlu0 }
 0x156   : > { %868 = vmatmul.msk.f32.gmra.mxu0 %vm285_vm0, %v238_v22 }
 0x159   : > { %v453_v23 = vpop.f32.mrf.mxu2 }
 0x15a   : > { %531 = vxpose.xlu2.b32.cont [2/16] (narrow) %v453_v23, 8 }
 0x15d   : > { %v239_v24 = vpop.trf.xlu0 }
 0x15e   : > { %869 = vmatmul.msk.f32.gmra.mxu0 %vm285_vm0, %v239_v24 }
 0x161   : > { %v456_v25 = vpop.f32.mrf.mxu2 }
 0x162   : > { %532 = vxpose.xlu2.b32.cont [3/16] (narrow) %v456_v25, 8 }
 0x165   : > { %v240_v26 = vpop.trf.xlu0 }
 0x166   : > { %870 = vmatmul.msk.f32.gmra.mxu0 %vm285_vm0, %v240_v26 }
 0x169   : > { %v459_v27 = vpop.f32.mrf.mxu2 }
 0x16a   : > { %533 = vxpose.xlu2.b32.cont [4/16] (narrow) %v459_v27, 8 }
 0x16d   : > { %v241_v28 = vpop.trf.xlu0 }
 0x16e   : > { %871 = vmatmul.msk.f32.gmra.mxu0 %vm285_vm0, %v241_v28 }
 0x171   : > { %v462_v29 = vpop.f32.mrf.mxu2 }
 0x172   : > { %534 = vxpose.xlu2.b32.cont [5/16] (narrow) %v462_v29, 8 }
 0x175   : > { %v242_v30 = vpop.trf.xlu0 }
 0x176   : > { %872 = vmatmul.msk.f32.gmra.mxu0 %vm285_vm0, %v242_v30 }
 0x179   : > { %v465_v31 = vpop.f32.mrf.mxu2 }
 0x17a   : > { %535 = vxpose.xlu2.b32.cont [6/16] (narrow) %v465_v31, 8 }
 0x17d   : > { %v243_v32 = vpop.trf.xlu0 }
 0x17e   : > { %873 = vmatmul.msk.f32.gmra.mxu0 %vm285_vm0, %v243_v32 }
 0x181   : > { %v468_v33 = vpop.f32.mrf.mxu2 }
 0x182   : > { %536 = vxpose.xlu2.b32.cont [7/16] (narrow) %v468_v33, 8 }
 0x185   : > { %v244_v34 = vpop.trf.xlu0 }
 0x186   : > { %874 = vmatmul.msk.f32.gmra.mxu0 %vm285_vm0, %v244_v34 }
 0x189   : > { %v471_v35 = vpop.f32.mrf.mxu2 }
 0x18a   : > { %537 = vxpose.xlu2.b32.cont [8/16] (narrow) %v471_v35, 8 }
 0x18d   : > { %v245_v36 = vpop.trf.xlu0 }
 0x18e   : > { %875 = vmatmul.msk.f32.vlgmr.msra.gmra.mxu1 %vm285_vm0, %v245_v36 }
 0x191   : > { %v474_v37 = vpop.f32.mrf.mxu3 }
 0x192   : > { %538 = vxpose.xlu2.b32.cont [9/16] (narrow) %v474_v37, 8 }
 0x195   : > { %v246_v38 = vpop.trf.xlu0 }
 0x196   : > { %876 = vmatmul.msk.f32.gmra.mxu1 %vm285_vm0, %v246_v38 }
 0x199   : > { %v477_v39 = vpop.f32.mrf.mxu3 }
 0x19a   : > { %539 = vxpose.xlu2.b32.cont [10/16] (narrow) %v477_v39, 8 }
 0x19d   : > { %v247_v40 = vpop.trf.xlu0 }
 0x19e   : > { %877 = vmatmul.msk.f32.gmra.mxu1 %vm285_vm0, %v247_v40 }
 0x1a1   : > { %v480_v41 = vpop.f32.mrf.mxu3 }
 0x1a2   : > { %540 = vxpose.xlu2.b32.cont [11/16] (narrow) %v480_v41, 8 }
 0x1a5   : > { %v248_v42 = vpop.trf.xlu0 }
 0x1a6   : > { %878 = vmatmul.msk.f32.gmra.mxu1 %vm285_vm0, %v248_v42 }
 0x1a9   : > { %v483_v43 = vpop.f32.mrf.mxu3 }
 0x1aa   : > { %541 = vxpose.xlu2.b32.cont [12/16] (narrow) %v483_v43, 8 }
 0x1ad   : > { %v249_v44 = vpop.trf.xlu0 }
 0x1ae   : > { %879 = vmatmul.msk.f32.gmra.mxu1 %vm285_vm0, %v249_v44 }
 0x1b1   : > { %v486_v45 = vpop.f32.mrf.mxu3 }
 0x1b2   : > { %542 = vxpose.xlu2.b32.cont [13/16] (narrow) %v486_v45, 8 }
 0x1b5   : > { %v250_v46 = vpop.trf.xlu0 }
 0x1b6   : > { %880 = vmatmul.msk.f32.gmra.mxu1 %vm285_vm0, %v250_v46 }
 0x1b9   : > { %v489_v47 = vpop.f32.mrf.mxu3 }
 0x1ba   : > { %543 = vxpose.xlu2.b32.cont [14/16] (narrow) %v489_v47, 8  ;;  %v1100_v47 = vmov 839922192  }
 0x1bd   : > { %v251_v48 = vpop.trf.xlu0 }
 0x1be   : > { %881 = vmatmul.msk.f32.gmra.mxu1 %vm285_vm0, %v251_v48  ;;  %v606_v48 = vunpack.c.l.s4 %v1100_v47 }
 0x1c1   : > { %v492_v49 = vpop.f32.mrf.mxu3 }
 0x1c2   : > { %544 = vxpose.xlu2.b32.cont [15/16] (narrow) %v492_v49, 8 }
 0x1c5   : > { %v252_v50 = vpop.trf.xlu0 }
 0x1c6   : > { %882 = vmatmul.msk.f32.gmra.mxu1 %vm285_vm0, %v252_v50 }
 0x1c9   : > { %v495_v51 = vpop.f32.mrf.mxu3 }
 0x1ca   : > { %545 = vxpose.xlu2.b32.end [16/16] (narrow) %v495_v51, 8  ;;  %v607_v51 = vunpack.c.0.s8 %v606_v48 }
 0x1cb   : > { %v402_v52 = vpop.f32.mrf.mxu0 }
 0x1cc   : > { %498 = vxpose.xlu1.b32.start [1/16] (narrow) %v402_v52, 8 }
 0x1d3   : > { %v405_v53 = vpop.f32.mrf.mxu0 }
 0x1d4   : > { %499 = vxpose.xlu1.b32.cont [2/16] (narrow) %v405_v53, 8 }
 0x1db   : > { %v408_v54 = vpop.f32.mrf.mxu0 }
 0x1dc   : > { %500 = vxpose.xlu1.b32.cont [3/16] (narrow) %v408_v54, 8 }
 0x1e3   : > { %v411_v55 = vpop.f32.mrf.mxu0 }
 0x1e4   : > { %501 = vxpose.xlu1.b32.cont [4/16] (narrow) %v411_v55, 8 }
 0x1eb   : > { %v414_v56 = vpop.f32.mrf.mxu0  ;;  %v546_v8 = vpop.trf.xlu2 }
 0x1ec   : > { %502 = vxpose.xlu1.b32.cont [5/16] (narrow) %v414_v56, 8  ;;  %v570_v9 = vsel %vm562_vm1, %v546_v8, -inf }
 0x1ed   : > { %v571_v11 = vrot.slane %v570_v9, 4 }
 0x1ef   : > { %v572_v13 = vmax.f32 %v570_v9, %v571_v11 }
 0x1f1   : > { %v573_v15 = vrot.slane %v572_v13, 2 }
 0x1f3   : > { %v417_v57 = vpop.f32.mrf.mxu0  ;;  %v574_v17 = vmax.f32 %v572_v13, %v573_v15 }
 0x1f4   : > { %503 = vxpose.xlu1.b32.cont [6/16] (narrow) %v417_v57, 8 }
 0x1f5   : > { %v575_v19 = vrot.slane %v574_v17, 1 }
 0x1f7   : > { %v576_v21 = vmax.f32 %v574_v17, %v575_v19 }
 0x1f9   : > { %v578_v23 = vsub.f32 %v546_v8, %v576_v21 }
 0x1fb   : > { %v420_v58 = vpop.f32.mrf.mxu0  ;;  %v581_v25 = vmul.f32 1.442695, %v578_v23 }
 0x1fc   : > { %504 = vxpose.xlu1.b32.cont [7/16] (narrow) %v420_v58, 8 }
 0x1fd   : > { %976 = vpow2.f32 %v581_v25 }
 0x203   : > { %v423_v59 = vpop.f32.mrf.mxu0  ;;  %v977_v28 = vpop.eup %976 }
 0x204   : > { %505 = vxpose.xlu1.b32.cont [8/16] (narrow) %v423_v59, 8  ;;  %v590_v29 = vsel %vm562_vm1, %v977_v28, 0.0 }
 0x205   : > { %v591_v31 = vrot.slane %v590_v29, 4 }
 0x207   : > { %v592_v33 = vadd.f32 %v591_v31, %v590_v29 }
 0x209   : > { %v593_v35 = vrot.slane %v592_v33, 2 }
 0x20b   : > { %v426_v60 = vpop.f32.mrf.mxu1  ;;  %v594_v37 = vadd.f32 %v593_v35, %v592_v33 }
 0x20c   : > { %506 = vxpose.xlu1.b32.cont [9/16] (narrow) %v426_v60, 8 }
 0x20d   : > { %v595_v39 = vrot.slane %v594_v37, 1 }
 0x20f   : > { %v596_v41 = vadd.f32 %v595_v39, %v594_v37 }
 0x213   : > { %v429_v61 = vpop.f32.mrf.mxu1 }
 0x214   : > { %507 = vxpose.xlu1.b32.cont [10/16] (narrow) %v429_v61, 8 }
 0x21b   : > { %v432_v62 = vpop.f32.mrf.mxu1 }
 0x21c   : > { %508 = vxpose.xlu1.b32.cont [11/16] (narrow) %v432_v62, 8 }
 0x223   : > { %v435_v63 = vpop.f32.mrf.mxu1 }
 0x224   : > { %509 = vxpose.xlu1.b32.cont [12/16] (narrow) %v435_v63, 8 }
 0x22b   : > { %v438_v1 = vpop.f32.mrf.mxu1 }
 0x22c   : > { %510 = vxpose.xlu1.b32.cont [13/16] (narrow) %v438_v1, 8  ;;  %974 = vset.pattern.permute.xlu2 %v1098_v6 }
 0x233   : > { %v441_v2 = vpop.f32.mrf.mxu1  ;;  %621 = vperm.xlu2 %974, %v214_v5  }
 0x234   : > { %511 = vxpose.xlu1.b32.cont [14/16] (narrow) %v441_v2, 8 }
 0x23b   : > { %v444_v3 = vpop.f32.mrf.mxu1 }
 0x23c   : > { %512 = vxpose.xlu1.b32.cont [15/16] (narrow) %v444_v3, 8 }
 0x243   : > { %v447_v4 = vpop.f32.mrf.mxu1 }
 0x244   : > { %513 = vxpose.xlu1.b32.end [16/16] (narrow) %v447_v4, 8 }
 0x270   : > { %v514_v10 = vpop.trf.xlu1 }
 0x271   : > { %v563_v12 = vsel %vm562_vm1, %v514_v10, -inf }
 0x272   : > { %v564_v14 = vrot.slane %v563_v12, 4 }
 0x274   : > { %v565_v16 = vmax.f32 %v563_v12, %v564_v14 }
 0x276   : > { %v566_v18 = vrot.slane %v565_v16, 2 }
 0x278   : > { %v567_v20 = vmax.f32 %v565_v16, %v566_v18 }
 0x27a   : > { %v568_v22 = vrot.slane %v567_v20, 1 }
 0x27c   : > { %v569_v24 = vmax.f32 %v567_v20, %v568_v22 }
 0x27e   : > { %v577_v26 = vsub.f32 %v514_v10, %v569_v24 }
 0x280   : > { %v579_v27 = vmul.f32 1.442695, %v577_v26 }
 0x282   : > { %978 = vpow2.f32 %v579_v27 }
 0x283   : > { %980 = vrcp.f32 %v596_v41 }
 0x288   : > { %v979_v30 = vpop.eup %978 }
 0x289   : > { %v583_v32 = vsel %vm562_vm1, %v979_v30, 0.0  ;;  %v981_v44 = vpop.eup %980 }
 0x28a   : > { %v584_v34 = vrot.slane %v583_v32, 4  ;;  %v1253_v45 = vmul.f32 %v981_v44, %v977_v28 }
 0x28c   : > { %v585_v36 = vadd.f32 %v584_v34, %v583_v32  ;;  %v612_v50 = vperm.slane %v1253_v45, 0  ;;  %v642_v54 = vperm.slane %v1253_v45, 1  ;;  %v663_v2 = vperm.slane %v1253_v45, 2 }
 0x28d   : > { %v622_v55 = vpop.permute.xlu2 %621  ;;  %v684_v8 = vperm.slane %v1253_v45, 3  ;;  %v705_v20 = vperm.slane %v1253_v45, 4  ;;  %v726_v32 = vperm.slane %v1253_v45, 5 }
 0x28e   : > { %v586_v38 = vrot.slane %v585_v36, 2  ;;  %v615_v53 = vrot.slane %v612_v50, 4  ;;  %v1261_v59 = vperm.slane %v622_v55, %v607_v51  ;;  %v645_v60 = vrot.slane %v642_v54, 4 }
 0x28f   : > { %v666_v6 = vrot.slane %v663_v2, 4  ;;  %v687_v16 = vrot.slane %v684_v8, 4  ;;  %v708_v28 = vrot.slane %v705_v20, 4 }
 0x290   : > { %v587_v40 = vadd.f32 %v586_v38, %v585_v36 }
 0x292   : > { %v588_v42 = vrot.slane %v587_v40, 1 }
 0x294   : > { %v589_v43 = vadd.f32 %v588_v42, %v587_v40  ;;  %v729_v40 = vrot.slane %v726_v32, 4 }
 0x296   : > { %982 = vrcp.f32 %v589_v43 }
 0x297   : > { %973 = vset.pattern.permute.xlu1 %v1099_v7 }
 0x29c   : > { %v983_v46 = vpop.eup %982 }
 0x29d   : > { %v1255_v49 = vmul.f32 %v983_v46, %v979_v30 }
 0x29e   : > { %603 = vperm.xlu1 %973, %v214_v5  }
 0x29f   : > { %v611_v56 = vperm.slane %v1255_v49, 0  ;;  %v641_v62 = vperm.slane %v1255_v49, 1  ;;  %v683_v17 = vperm.slane %v1255_v49, 3  ;;  %v704_v29 = vperm.slane %v1255_v49, 4 }
 0x2a0   : > { %v725_v41 = vperm.slane %v1255_v49, 5 }
 0x2a1   : > { %v617_v61 = vsel %vm616_vm2, %v611_v56, %v615_v53  ;;  %v646_v3 = vsel %vm616_vm2, %v641_v62, %v645_v60  ;;  %v688_v21 = vsel %vm616_vm2, %v683_v17, %v687_v16  ;;  %v709_v33 = vsel %vm616_vm2, %v704_v29, %v708_v28 }
 0x2a2   : > { %v730_v44 = vsel %vm616_vm2, %v725_v41, %v729_v40 }
 0x310   : > { %v604_v52 = vpop.permute.xlu1 %603 }
 0x311   : > { %v608_v57 = vperm.slane %v604_v52, %v607_v51 }
 0x313   : > { %v610_v58 = vmul.f32 %v608_v57, %v1204_v0  ;;  %v662_v0 = vperm.slane %v1255_v49, 2 }
 0x315   : > { %v619_v63 = vmul.f32 %v617_v61, %v610_v58  ;;  %v648_v5 = vmul.f32 %v646_v3, %v610_v58  ;;  %v667_v9 = vsel %vm616_vm2, %v662_v0, %v666_v6  ;;  %v690_v23 = vmul.f32 %v688_v21, %v610_v58 }
 0x316   : > { %v669_v11 = vmul.f32 %v667_v9, %v610_v58  ;;  %v711_v35 = vmul.f32 %v709_v33, %v610_v58  ;;  %v732_v46 = vmul.f32 %v730_v44, %v610_v58 }
 0x317   : > { %v628_v1 = vadd.f32 %v1261_v59, %v619_v63  ;;  %v649_v7 = vadd.f32 %v648_v5, %v1261_v59  ;;  %v691_v31 = vadd.f32 %v690_v23, %v1261_v59 }
 0x318   : > { %v670_v19 = vadd.f32 %v669_v11, %v1261_v59  ;;  %v712_v43 = vadd.f32 %v711_v35, %v1261_v59  ;;  %v733_v53 = vadd.f32 %v732_v46, %v1261_v59 }
 0x319   : > { %v629_v4 = vmax.f32 %v628_v1, 0.0  ;;  %v650_v10 = vmax.f32 %v649_v7, 0.0  ;;  %v692_v34 = vmax.f32 %v691_v31, 0.0  ;;  %v1101_v1 = vmov 0.0  }
 0x31a   : > { %v671_v22 = vmax.f32 %v670_v19, 0.0  ;;  %v713_v45 = vmax.f32 %v712_v43, 0.0  ;;  %v734_v49 = vmax.f32 %v733_v53, 0.0  ;;  %211 = vst.msk [vmem:[%s204_s30] sm:$0xf] %vm210_vm3, %v1101_v1 }
 0x31b   : > { %631 = vst [vmem:[#allocation1] ss:$2 sm:$0xff] %v629_v4 }
 0x321   : > { %v746_v9 = vld [vmem:[%s204_s30] sm:$0xf] }
 0x322   : > { %v632_v12 = vld.sshfl [vmem:[#allocation1] sm:$0xff pattern:$0x75316420]  ;;  %v633_v13 = vld.sshfl [vmem:[#allocation1 + $0x8] sm:$0xff pattern:$0x75316420] }
 0x323   : > { %v636_v14 = vsel %vm616_vm2, %v632_v12, 0.0  ;;  %v637_v15 = vsel %vm616_vm2, %v633_v13, 0.0  ;;  %652 = vst [vmem:[#allocation1] ss:$2 sm:$0xff] %v650_v10 }
 0x324   : > { %v638_v18 = vadd.f32 %v637_v15, %v636_v14 }
 0x326   : > { %639 = vadd.xlane.f32.xlu0 %v638_v18 }
 0x32a   : > { %v653_v24 = vld.sshfl [vmem:[#allocation1] sm:$0xff pattern:$0x75316420]  ;;  %v654_v25 = vld.sshfl [vmem:[#allocation1 + $0x8] sm:$0xff pattern:$0x75316420] }
 0x32b   : > { %v657_v26 = vsel %vm616_vm2, %v653_v24, 0.0  ;;  %v658_v27 = vsel %vm616_vm2, %v654_v25, 0.0  ;;  %673 = vst [vmem:[#allocation1] ss:$2 sm:$0xff] %v671_v22 }
 0x32c   : > { %v659_v30 = vadd.f32 %v658_v27, %v657_v26 }
 0x32e   : > { %660 = vadd.xlane.f32.xlu1 %v659_v30 }
 0x332   : > { %v674_v36 = vld.sshfl [vmem:[#allocation1] sm:$0xff pattern:$0x75316420]  ;;  %v675_v37 = vld.sshfl [vmem:[#allocation1 + $0x8] sm:$0xff pattern:$0x75316420] }
 0x333   : > { %v678_v38 = vsel %vm616_vm2, %v674_v36, 0.0  ;;  %v679_v39 = vsel %vm616_vm2, %v675_v37, 0.0  ;;  %694 = vst [vmem:[#allocation1] ss:$2 sm:$0xff] %v692_v34 }
 0x334   : > { %v680_v42 = vadd.f32 %v679_v39, %v678_v38 }
 0x336   : > { %681 = vadd.xlane.f32.xlu2 %v680_v42 }
 0x33a   : > { %v695_v47 = vld.sshfl [vmem:[#allocation1] sm:$0xff pattern:$0x75316420]  ;;  %v696_v48 = vld.sshfl [vmem:[#allocation1 + $0x8] sm:$0xff pattern:$0x75316420] }
 0x33b   : > { %v699_v50 = vsel %vm616_vm2, %v695_v47, 0.0  ;;  %v700_v51 = vsel %vm616_vm2, %v696_v48, 0.0  ;;  %715 = vst [vmem:[#allocation1] ss:$2 sm:$0xff] %v713_v45 }
 0x33c   : > { %v701_v52 = vadd.f32 %v700_v51, %v699_v50 }
 0x33e   : > { %702 = vadd.xlane.f32.xlu1 %v701_v52 }
 0x342   : > { %v716_v54 = vld.sshfl [vmem:[#allocation1] sm:$0xff pattern:$0x75316420]  ;;  %v717_v55 = vld.sshfl [vmem:[#allocation1 + $0x8] sm:$0xff pattern:$0x75316420] }
 0x343   : > { %v720_v56 = vsel %vm616_vm2, %v716_v54, 0.0  ;;  %v721_v57 = vsel %vm616_vm2, %v717_v55, 0.0  ;;  %736 = vst [vmem:[#allocation1] ss:$2 sm:$0xff] %v734_v49 }
 0x344   : > { %v722_v58 = vadd.f32 %v721_v57, %v720_v56 }
 0x346   : > { %723 = vadd.xlane.f32.xlu1 %v722_v58 }
 0x34a   : > { %v737_v60 = vld.sshfl [vmem:[#allocation1] sm:$0xff pattern:$0x75316420]  ;;  %v738_v61 = vld.sshfl [vmem:[#allocation1 + $0x8] sm:$0xff pattern:$0x75316420] }
 0x34b   : > { %v741_v62 = vsel %vm616_vm2, %v737_v60, 0.0  ;;  %v742_v63 = vsel %vm616_vm2, %v738_v61, 0.0 }
 0x34c   : > { %v743_v59 = vadd.f32 %v742_v63, %v741_v62 }
 0x34e   : > { %744 = vadd.xlane.f32.xlu2 %v743_v59 }
 0x399   : > { %v640_v5 = vpop.xlane.xlu0 %639 }
 0x3a1   : > { %v661_v2 = vpop.xlane.xlu1 %660 }
 0x3a2   : > { %v748_v6 = vsel %vm747_vm4, %v640_v5, %v661_v2 }
 0x3a9   : > { %v682_v4 = vpop.xlane.xlu2 %681 }
 0x3aa   : > { %v750_v7 = vsel %vm749_vm5, %v748_v6, %v682_v4 }
 0x3b1   : > { %v703_v3 = vpop.xlane.xlu1 %702 }
 0x3b2   : > { %v752_v8 = vsel %vm751_vm6, %v750_v7, %v703_v3 }
 0x3b9   : > { %v724_v0 = vpop.xlane.xlu1 %723 }
 0x3ba   : > { %v753_v10 = vsel %vm285_vm0, %v752_v8, %v724_v0 }
 0x3c1   : > { %v745_v11 = vpop.xlane.xlu2 %744 }
 0x3c2   : > { %v755_v12 = vsel %vm754_vm7, %v753_v10, %v745_v11 }
 0x3c3   : > { %v756_v13 = vadd.f32 %v755_v12, %v746_v9 }
 0x3c5   : > { %758 = vst.msk [vmem:[%s204_s30] sm:$0xf] %vm210_vm3, %v756_v13 }
 0x3c6   : > { %1041 = shalt.err (!%p1038_p13)
}
 0x3c7   : > { %909 = dma.vmem_to_hbm [thread:$0]  (%p1173_p9), %s773_s8, 64, %s775_s9, %s760_s15  }
 0x3c8 PF: > { %s786_s11 = sand.u32 1, %s1076_s12   ;;  %p916_p0 = pnand %p859_p12, %p1180_p11 }
 0x3c9   : > { %s787_s28 = scalar_lea.sflag [#allocation4], %s786_s11 }
 0x3ca   : > { %p917_p1 = pneg %p916_p0 }
 0x3cc   : > { %1071 = dma.done.wait (%p917_p1), %s787_s28, 64  }
 0x3cd   : > { %1073 = vsyncadd (%p917_p1), %s787_s28, 4294967232  ;;  %s19_s17 = sadd.s32 1, %s1096_s17   ;;  %s1346_s12 = smov %s1080_s13 }
 0x3ce   : > { %p16_p2 = scmp.ge.s32.totalorder %s19_s17, 4   ;;  %s1347_s13 = smov %s1084_s14 }
 0x3cf   : > { %s1348_s14 = smov %s1178_s26  ;;  %s1349_s15 = smov %s1092_s16 }
 0x3d0   : > { %s1350_s16 = smov %s1352_s20  ;;  %18 = sbr.rel (!%p16_p2) target bundleno = 6 (0x6), region = 81 }
 0x3d5   :  { %793 = vsyncpa [#allocation3], 1 }
 0x3d6   :  { %795 = vsyncpa [#allocation3 + $0x1], 1 }
 0x3d7   :  { %796 = vsyncpa [#allocation4], 1 }
 0x3d8   :  { %798 = vsyncpa [#allocation4 + $0x1], 1 }

</bundles_post_ra>
